<compile_context>
chip_gen: v5e
topology: v5e:2x2
jax: 0.10.0
libtpu: 0.0.40
codegen_flags: <defaults>
</compile_context>

<pallas_src>
import functools

import jax
import jax.numpy as jnp
from jax.experimental import pallas as pl
from jax.experimental.pallas import tpu as pltpu

EMB_DIM = 512


def _vmem_budget_bytes():
    """Usable VMEM budget for kernel buffers (leaves compiler headroom)."""
    cap = 64 * 1024 * 1024                      # v7x per-TC capacity (tight case)
    try:
        cap = int(pltpu.get_tpu_info().vmem_capacity_bytes)
    except Exception:
        pass
    return int(cap * 0.7)


def _tile_bytes(tm, tk):
    dx_buf = 2 * tm * tk * 2                    # double-buffered bf16 dx tile
    w_buf = 2 * tk * EMB_DIM * 2                # double-buffered bf16 W_embed tile
    acc = tm * EMB_DIM * 4                      # f32 accumulator scratch
    epilogue = 2 * tm * EMB_DIM * 4             # abs / dropout temporaries (rough)
    misc = 4 * EMB_DIM + 8 * tm + 4096
    return dx_buf + w_buf + acc + epilogue + misc


def _select_tiles(B, d_in, batch_tiles, budget):
    # Batch tiles: default 1 so W_embed is streamed exactly once.  On v7x pass
    # batch_tiles=2 so each TensorCore streams a disjoint half of the batch.
    n_bt = 1 if batch_tiles is None else int(batch_tiles)
    if n_bt < 1 or B % n_bt != 0:
        n_bt = 1
    tm = B // n_bt
    # If even the minimal tk does not fit the budget, shrink tm (more batch tiles).
    while tm > 1 and tm % 2 == 0 and _tile_bytes(tm, min(128, d_in)) > budget:
        tm //= 2
    n_bt = B // tm
    # Largest feature tile that divides d_in and fits the budget.
    tk = None
    for cand in (8192, 4096, 2048, 1024, 512, 256, 128):
        if d_in % cand == 0 and _tile_bytes(tm, cand) <= budget:
            tk = cand
            break
    if tk is None:
        tk = d_in      # full-extent block (legal for any size; tiny/odd d_in)
    return tm, tk, n_bt


def _siamese_kernel(seed_ref,            # SMEM (1,)      int32  dropout seed
                    dx_ref,              # VMEM (tm, tk)  bf16   (x1 - x2) tile
                    we_ref,              # VMEM (tk, 512) bf16   embedding stub weight
                    wf_ref,              # VMEM (1, 512)  f32    fc weight (row)
                    b_ref,               # SMEM (1,)      f32    fc bias
                    o_ref,               # VMEM (tm, 1)   f32    output logits
                    acc_ref,             # VMEM (tm, 512) f32    scratch accumulator
                    *, dropout_rate, training):
    k = pl.program_id(1)

    @pl.when(k == 0)
    def _():
        acc_ref[...] = jnp.zeros_like(acc_ref)

    # Single bf16 MXU matmul on the wrapper-fused difference, f32 accumulation.
    acc_ref[...] += jnp.dot(dx_ref[...], we_ref[...],
                            preferred_element_type=jnp.float32)

    @pl.when(k == pl.num_programs(1) - 1)
    def _():
        d = jnp.abs(acc_ref[...])                        # (tm, 512) f32, VPU
        wf = wf_ref[...]                                 # (1, 512)  f32

        if training:
            # Inverted dropout via integer threshold on raw PRNG bits; mix the
            # batch-tile id into the seed so row tiles get independent masks.
            pltpu.prng_seed(seed_ref[0] + pl.program_id(0))
            bits = pltpu.bitcast(pltpu.prng_random_bits(d.shape), jnp.uint32)
            thr = jnp.uint32(min(int(round(dropout_rate * (2.0 ** 32))),
                                 (1 << 32) - 1))
            d = jnp.where(bits >= thr, d, 0.0)
            wf = wf * (1.0 / (1.0 - dropout_rate))       # fold keep-scale into fc

        # fc (512 -> 1) as VPU multiply + XLU lane-reduce (keeps the MXU free).
        o_ref[...] = jnp.sum(d * wf, axis=-1, keepdims=True) + b_ref[0]


def siamese_forward(x1, x2, w_embed, w_fc, b_fc, *,
                    dropout_rate=0.75, training=False, seed=0,
                    batch_tiles=None):
    """x1, x2: NCHW images (B, C, H, W). Returns (B, 1) logits."""
    B = x1.shape[0]

    # Difference fused in the wrapper: f32 subtract, single bf16 cast.
    x1f = x1.reshape(B, -1).astype(jnp.float32)
    x2f = x2.reshape(B, -1).astype(jnp.float32)
    dx = (x1f - x2f).astype(jnp.bfloat16)
    d_in = dx.shape[1]

    we = w_embed.astype(jnp.bfloat16)                    # (d_in, 512)
    # TODO(synk): on v5e/v6e an int8 W_embed (per-column f32 scales) and on v7x
    # an fp8 W_embed would halve the dominant HBM stream again.
    wf_row = w_fc.reshape(1, EMB_DIM).astype(jnp.float32)
    b_sm = b_fc.reshape(1).astype(jnp.float32)
    seed_arr = jnp.asarray([seed], dtype=jnp.int32)

    budget = _vmem_budget_bytes()
    tm, tk, n_bt = _select_tiles(B, d_in, batch_tiles, budget)
    grid = (n_bt, d_in // tk)

    kernel = functools.partial(_siamese_kernel,
                               dropout_rate=float(dropout_rate),
                               training=bool(training))

    flops = 2 * B * d_in * EMB_DIM + 3 * B * EMB_DIM
    # dx once + W_embed once per batch tile + fc params + output.
    bytes_accessed = (B * d_in * 2 + n_bt * d_in * EMB_DIM * 2
                      + EMB_DIM * 4 + 4 + B * 4)

    # Right-size the scoped VMEM limit from the computed tile need.
    vmem_limit = max(32 << 20, _tile_bytes(tm, tk) + (16 << 20))

    return pl.pallas_call(
        kernel,
        out_shape=jax.ShapeDtypeStruct((B, 1), jnp.float32),
        grid_spec=pltpu.PrefetchScalarGridSpec(
            num_scalar_prefetch=0,
            grid=grid,
            in_specs=[
                pl.BlockSpec(memory_space=pltpu.SMEM),              # seed
                pl.BlockSpec((tm, tk), lambda i, k: (i, k)),        # dx tile
                # If xprof shows exposed DMA waits on this (dominant) stream,
                # add pipeline_mode=pl.Buffered(3) here only.
                pl.BlockSpec((tk, EMB_DIM), lambda i, k: (k, 0)),   # W_embed tile
                pl.BlockSpec((1, EMB_DIM), lambda i, k: (0, 0)),    # fc weight row
                pl.BlockSpec(memory_space=pltpu.SMEM),              # fc bias
            ],
            # (B, 1) matches the module; at realistic B a lane-dense (1, B)
            # out_spec would avoid masked vst stores in the (cold) epilogue.
            out_specs=pl.BlockSpec((tm, 1), lambda i, k: (i, 0)),
            scratch_shapes=[pltpu.VMEM((tm, EMB_DIM), jnp.float32)],
        ),
        compiler_params=pltpu.CompilerParams(
            dimension_semantics=("parallel", "arbitrary"),
            vmem_limit_bytes=int(vmem_limit)),
        cost_estimate=pl.CostEstimate(flops=flops, transcendentals=0,
                                      bytes_accessed=bytes_accessed),
    )(seed_arr, dx, we, wf_row, b_sm)


def reference_forward(x1, x2, w_embed, w_fc, b_fc):
    """Pure-JAX f32 reference of the module semantics (eval: dropout = id)."""
    B = x1.shape[0]
    e1 = x1.reshape(B, -1).astype(jnp.float32) @ w_embed.astype(jnp.float32)
    e2 = x2.reshape(B, -1).astype(jnp.float32) @ w_embed.astype(jnp.float32)
    d = jnp.abs(e1 - e2)
    return d @ w_fc.astype(jnp.float32) + b_fc.reshape(1, 1)


if __name__ == "__main__":
    key = jax.random.PRNGKey(0)
    k_x1, k_x2, k_we, k_wf, k_b = jax.random.split(key, 5)

    # Small NCHW RGB images consistent with the module's forward.
    B, C, H, W = 2, 3, 16, 16
    d_in = C * H * W

    x1 = jax.random.normal(k_x1, (B, C, H, W), dtype=jnp.float32)
    x2 = jax.random.normal(k_x2, (B, C, H, W), dtype=jnp.float32)

    # Deterministic synthetic parameters (no checkpoint loading).
    w_embed = jax.random.normal(k_we, (d_in, EMB_DIM), dtype=jnp.float32) * 0.02
    w_fc = jax.random.normal(k_wf, (EMB_DIM, 1), dtype=jnp.float32) * 0.05
    b_fc = jax.random.normal(k_b, (1,), dtype=jnp.float32) * 0.01

    out = siamese_forward(x1, x2, w_embed, w_fc, b_fc,
                          dropout_rate=0.75, training=False)
    out = jax.block_until_ready(out)

    ref = reference_forward(x1, x2, w_embed, w_fc, b_fc)
    assert out.shape == (B, 1), out.shape
    # bf16 MXU kernel vs f32 reference -> loose tolerance.
    assert jnp.allclose(out, ref, atol=5e-2, rtol=5e-2), (out, ref)

    print("KERNEL_OK")
</pallas_src>

<mosaic_0001>
module attributes {stable_mosaic.version = 11 : i64} {
  func.func @_siamese_kernel(%arg0: i32, %arg1: i32, %arg2: memref<1xi32, #tpu.memory_space<smem>>, %arg3: memref<2x256xbf16, #tpu.memory_space<vmem>>, %arg4: memref<256x512xbf16, #tpu.memory_space<vmem>>, %arg5: memref<1x512xf32, #tpu.memory_space<vmem>>, %arg6: memref<1xf32, #tpu.memory_space<smem>>, %arg7: memref<2x1xf32, #tpu.memory_space<vmem>>, %arg8: memref<2x512xf32, #tpu.memory_space<vmem>>) attributes {dimension_semantics = [#tpu.dimension_semantics<parallel>, #tpu.dimension_semantics<arbitrary>], iteration_bounds = array<i64: 1, 3>, scalar_prefetch = 0 : i64, scratch_operands = 1 : i64, tpu.core_type = #tpu.core_type<tc>, window_params = [{transform_indices = @transform_0, window_bounds = array<i64: 1>}, {transform_indices = @transform_1, window_bounds = array<i64: 2, 256>}, {transform_indices = @transform_2, window_bounds = array<i64: 256, 512>}, {pipeline_mode = #tpu.pipeline_mode<synchronous>, transform_indices = @transform_3, window_bounds = array<i64: 1, 512>}, {transform_indices = @transform_4, window_bounds = array<i64: 1>}, {transform_indices = @transform_5, window_bounds = array<i64: 2, 1>}]} {
    %c0_i32 = arith.constant 0 : i32
    %0 = arith.cmpi eq, %arg1, %c0_i32 : i32
    %1 = arith.extui %0 : i1 to i32
    %c0_i32_0 = arith.constant 0 : i32
    %2 = arith.cmpi ne, %1, %c0_i32_0 : i32
    scf.if %2 {
      %cst_9 = arith.constant 0.000000e+00 : f32
      %12 = vector.broadcast %cst_9 : f32 to vector<2x512xf32>
      %c0_10 = arith.constant 0 : index
      %c0_11 = arith.constant 0 : index
      %13 = vector.load %arg8[%c0_10, %c0_11] : memref<2x512xf32, #tpu.memory_space<vmem>>, vector<2x512xf32>
      tpu.vector_store %arg8[%c0_10, %c0_11], %12 {strides = array<i32>} : memref<2x512xf32, #tpu.memory_space<vmem>>, vector<2x512xf32>,
    } else {
    }
    %c0 = arith.constant 0 : index
    %c0_1 = arith.constant 0 : index
    %3 = vector.load %arg8[%c0, %c0_1] : memref<2x512xf32, #tpu.memory_space<vmem>>, vector<2x512xf32>
    %c0_2 = arith.constant 0 : index
    %c0_3 = arith.constant 0 : index
    %4 = vector.load %arg3[%c0_2, %c0_3] : memref<2x256xbf16, #tpu.memory_space<vmem>>, vector<2x256xbf16>
    %c0_4 = arith.constant 0 : index
    %c0_5 = arith.constant 0 : index
    %5 = vector.load %arg4[%c0_4, %c0_5] : memref<256x512xbf16, #tpu.memory_space<vmem>>, vector<256x512xbf16>
    %cst = arith.constant dense<0.000000e+00> : vector<2x512xf32>
    %6 = tpu.matmul %4, %5, %cst {dimension_numbers = #tpu.dot_dimension_numbers<[1], [0], [0], [1], [0, 0, 1, 1], [], []>} : vector<2x256xbf16>, vector<256x512xbf16>, vector<2x512xf32> -> vector<2x512xf32>
    %7 = arith.addf %3, %6 : vector<2x512xf32>
    %c0_6 = arith.constant 0 : index
    %c0_7 = arith.constant 0 : index
    %8 = vector.load %arg8[%c0_6, %c0_7] : memref<2x512xf32, #tpu.memory_space<vmem>>, vector<2x512xf32>
    tpu.vector_store %arg8[%c0_6, %c0_7], %7 {strides = array<i32>} : memref<2x512xf32, #tpu.memory_space<vmem>>, vector<2x512xf32>,
    %c2_i32 = arith.constant 2 : i32
    %9 = arith.cmpi eq, %arg1, %c2_i32 : i32
    %10 = arith.extui %9 : i1 to i32
    %c0_i32_8 = arith.constant 0 : i32
    %11 = arith.cmpi ne, %10, %c0_i32_8 : i32
    scf.if %11 {
      %c0_9 = arith.constant 0 : index
      %c0_10 = arith.constant 0 : index
      %12 = vector.load %arg8[%c0_9, %c0_10] : memref<2x512xf32, #tpu.memory_space<vmem>>, vector<2x512xf32>
      %13 = math.absf %12 : vector<2x512xf32>
      %c0_11 = arith.constant 0 : index
      %c0_12 = arith.constant 0 : index
      %14 = vector.load %arg5[%c0_11, %c0_12] : memref<1x512xf32, #tpu.memory_space<vmem>>, vector<1x512xf32>
      %15 = vector.broadcast %14 : vector<1x512xf32> to vector<2x512xf32>
      %16 = arith.mulf %13, %15 : vector<2x512xf32>
      %cst_13 = arith.constant dense<0.000000e+00> : vector<2xf32>
      %17 = vector.multi_reduction <add>, %16, %cst_13 [1] : vector<2x512xf32> to vector<2xf32>
      %18 = vector.shape_cast %17 : vector<2xf32> to vector<2x1xf32>
      %c0_14 = arith.constant 0 : index
      %19 = memref.load %arg6[%c0_14] : memref<1xf32, #tpu.memory_space<smem>>
      %20 = vector.broadcast %19 : f32 to vector<2x1xf32>
      %21 = arith.addf %18, %20 : vector<2x1xf32>
      %c0_15 = arith.constant 0 : index
      %c0_16 = arith.constant 0 : index
      %22 = vector.load %arg7[%c0_15, %c0_16] : memref<2x1xf32, #tpu.memory_space<vmem>>, vector<2x1xf32>
      tpu.vector_store %arg7[%c0_15, %c0_16], %21 {strides = array<i32>} : memref<2x1xf32, #tpu.memory_space<vmem>>, vector<2x1xf32>,
    } else {
    }
    return
  }
  func.func @transform_0(%arg0: i32, %arg1: i32) -> i32 {
    %c0_i32 = arith.constant 0 : i32
    %c0_i32_0 = arith.constant 0 : i32
    return %c0_i32 : i32
  }
  func.func @transform_1(%arg0: i32, %arg1: i32) -> (i32, i32) {
    %c0_i32 = arith.constant 0 : i32
    return %arg0, %arg1 : i32, i32
  }
  func.func @transform_2(%arg0: i32, %arg1: i32) -> (i32, i32) {
    %c0_i32 = arith.constant 0 : i32
    %c0_i32_0 = arith.constant 0 : i32
    return %arg1, %c0_i32 : i32, i32
  }
  func.func @transform_3(%arg0: i32, %arg1: i32) -> (i32, i32) {
    %c0_i32 = arith.constant 0 : i32
    %c0_i32_0 = arith.constant 0 : i32
    %c0_i32_1 = arith.constant 0 : i32
    return %c0_i32, %c0_i32_0 : i32, i32
  }
  func.func @transform_4(%arg0: i32, %arg1: i32) -> i32 {
    %c0_i32 = arith.constant 0 : i32
    %c0_i32_0 = arith.constant 0 : i32
    return %c0_i32 : i32
  }
  func.func @transform_5(%arg0: i32, %arg1: i32) -> (i32, i32) {
    %c0_i32 = arith.constant 0 : i32
    %c0_i32_0 = arith.constant 0 : i32
    return %arg0, %c0_i32 : i32, i32
  }
}

</mosaic_0001>

<bundles_post_ra>
// kernel: tpu_custom_call.1
= control target key start
LH: loop header
LB: loop body
LE: loop exit
PB: predicated region body
PF: predicated region fallthrough
CT: control target
= control target key end

     0   :  { %s1783_s0 = inlined_call_operand.<no memory space> [shape: s32[1], index: 0, kind: input, shape index: {}]   ;;  %s1784_s1 = inlined_call_operand.hbm [shape: bf16[2,768], index: 1, kind: input, shape index: {}]   ;;  %s1785_s2 = inlined_call_operand.hbm [shape: bf16[768,512], index: 2, kind: input, shape index: {}]   ;;  %s1786_s3 = inlined_call_operand.vmem [shape: f32[1,512], index: 3, kind: input, shape index: {}]   ;;  %s1787_s4 = inlined_call_operand.<no memory space> [shape: f32[1], index: 4, kind: input, shape index: {}]   ;;  %s1788_s5 = inlined_call_operand.vmem [shape: f32[2,1], index: 5, kind: output, shape index: {}]  }
   0x1   :  { %11 = sst [smem:[#allocation4]] %s1787_s4 }
   0x2   :  { %12 = vsyncpa [#allocation6], 0 }
   0x3   :  { %14 = vsyncpa [#allocation6 + $0x1], 0 }
   0x4   :  { %15 = vsyncpa [#allocation8], 0 }
   0x5   :  { %17 = vsyncpa [#allocation8 + $0x1], 0  ;;  %s1515_s0 = smov 0   ;;  %s1517_s20 = smov 0  }
   0x6   :  { %s1519_s21 = smov 0   ;;  %s1521_s22 = smov 0  }
   0x7   :  { %s1523_s23 = smov 0   ;;  %s1525_s24 = smov 0  }
   0x8 LB: > { %s961_s4 = sadd.s32 4294967295, %s1477_s24   ;;  %s32_s25 = sadd.s32 1, %s1473_s23  ;;  %s1477_s24 = sphi %s1525_s24, %s23_s24   ;;  %s1473_s23 = sphi %s1523_s23, %s1796_s23   ;;  %s1469_s22 = sphi %s1521_s22, %s1795_s22   ;;  %s1465_s21 = sphi %s1519_s21, %s1794_s21   ;;  %s1461_s20 = sphi %s1517_s20, %s1793_s20   ;;  %s1457_s0 = sphi %s1515_s0, %s1792_s0  }
   0x9   : > { %p33_p0 = scmp.ge.s32.totalorder %s32_s25, 3  ;;  %s65_s26 = sadd.s32 1, %s1465_s21 }
   0xa   : > { %p72_p1 = scmp.ne.s32.totalorder %s1465_s21, %s1461_s20  ;;  %p73_p2 = scmp.eq.s32.totalorder %s1477_s24, 0 }
   0xb   : > { %s1798_s25 = smov (%p33_p0, %s32_s25), 0  ;;  %p78_p4 = scmp.ne.s32.totalorder %s1461_s20, %s1457_s0 }
   0xc   : > { %p1551_p3 = por %p73_p2, %p72_p1  ;;  %s61_s28 = ssub.s32 %s1473_s23, %s1798_s25 }
   0xd   : > { %p79_p5 = scmp.eq.s32.totalorder %s961_s4, 0  ;;  %p63_p6 = scmp.eq.s32.totalorder %s61_s28, 0 }
   0xe   : > { %p1311_p8 = scmp.lt.s32.totalorder %s1477_s24, 3  ;;  %s1567_s6 = sand.u32 1, %s1465_s21  }
   0xf   : > { %p1558_p7 = por %p79_p5, %p78_p4  ;;  %s965_s7 = sshll.u32 %s1473_s23, 1 }
  0x10   : > { %s1564_s30 = scalar_select %p63_p6, %s1465_s21, %s65_s26  }
  0x11   : > { %s964_s8 = sshll.u32 %s1567_s6, 1  ;;  %s215_s11 = scalar_lea.hbm %s1784_s1, %s965_s7 }
  0x12   : > { %s217_s12 = sshll.u32 %s215_s11, 4  ;;  %s209_s13 = scalar_lea.vmem [#allocation5], %s964_s8  ;;  %s218_s12 = int_to_ptr.hbm [resolvable:$true] %s217_s12 }
  0x13   : > { %s219_s14 = sshll.u32 %s209_s13, 4  ;;  %p1576_p9 = pnand %p1311_p8, %p1551_p3  ;;  %s220_s14 = int_to_ptr.vmem [resolvable:$true] %s219_s14 }
  0x14   : > { %p970_p10 = scmp.ge.s32.totalorder %s1477_s24, 1  ;;  %p247_p11 = scmp.lt.s32.totalorder %s1477_s24, 4 }
  0x15   : > { %s966_s16 = sshll.u32 %s1567_s6, 9  ;;  %s206_s17 = scalar_lea.sflag [#allocation6], %s1567_s6 }
  0x16   : > { %1307 = dma.hbm_to_vmem [thread:$0]  (!%p1576_p9), %s218_s12, 32, %s220_s14, %s206_s17  }
  0x17   : > { %p248_p12 = pnand %p970_p10, %p247_p11  ;;  %s1235_s18 = sshll.u32 %s1473_s23, 9 }
  0x18   : > { %s230_s19 = scalar_lea.vmem [#allocation7], %s966_s16  ;;  %s236_s27 = scalar_lea.hbm %s1785_s2, %s1235_s18 }
  0x19   : > { %s239_s0 = sshll.u32 %s230_s19, 4  ;;  %s237_s28 = sshll.u32 %s236_s27, 4  ;;  %s240_s0 = int_to_ptr.vmem [resolvable:$true] %s239_s0  ;;  %s238_s28 = int_to_ptr.hbm [resolvable:$true] %s237_s28 }
  0x1a   : > { %s227_s7 = scalar_lea.sflag [#allocation8], %s1567_s6  ;;  %s1479_s8 = smov 256  }
  0x1b   : > { %s1480_s9 = smov 16   ;;  %251 = sbr.rel (%p248_p12) target bundleno = 400 (0x190), region = 40 }
  0x1c   : > { %1310 = dma.hbm_to_vmem [thread:$0]  (!%p1576_p9), %s238_s28, 8192, %s240_s0, %s227_s7, %s1479_s8, %s1479_s8, %s1480_s9  }
  0x1d   : > { %s253_s10 = sand.u32 (!%p248_p12), 1, %s1461_s20  }
  0x1e   : > { %s971_s11 = sshll.u32 (!%p248_p12), %s253_s10, 1  ;;  %s254_s12 = scalar_lea.sflag (!%p248_p12), [#allocation6], %s253_s10 }
  0x1f   : > { %s1594_s13 = scalar_lea.vmem (!%p248_p12), [#allocation5], %s971_s11 }
  0x20   : > { %1448 = dma.done.wait (%p1558_p7), %s254_s12, 32  }
  0x21   : > { %1450 = vsyncadd (%p1558_p7), %s254_s12, 4294967264  ;;  %s972_s14 = sshll.u32 %s253_s10, 9  ;;  %s264_s6 = scalar_lea.sflag [#allocation8], %s253_s10 }
  0x22   : > { %s1600_s16 = scalar_lea.vmem [#allocation7], %s972_s14 }
  0x23   : > { %1452 = dma.done.wait (%p1558_p7), %s264_s6, 8192  }
  0x24   : > { %1454 = vsyncadd (%p1558_p7), %s264_s6, 4294959104  ;;  %p973_p13 = scmp.ne.s32.totalorder %s1469_s22, 0 }
  0x26   : > { %308 = sbr.rel (%p973_p13) target bundleno = 45 (0x2d), region = 52 }
  0x2b   : > { %v1481_v0 = vmov 0.0  }
  0x2c   : > { %309 = vst [vmem:[#allocation2] sm:$0xff] %v1481_v0 }
  0x2d PF: > { %v1088_v1 = vld [vmem:[%s1600_s16 + $0xe0] sm:$0xf]  ;;  %v1266_v2 = vld [vmem:[%s1600_s16 + $0xec] sm:$0xf0]  ;;  %v1264_v6 = vld [vmem:[%s1600_s16 + $0xe4] sm:$0xf] }
  0x2e   : > { %v1216_v3 = vld [vmem:[%s1600_s16 + $0x1e0] sm:$0xf]  ;;  %v1089_v4 = vor.u32 %v1266_v2, %v1088_v1  ;;  %v1298_v5 = vld [vmem:[%s1600_s16 + $0x1ec] sm:$0xf0]  ;;  %v1090_v7 = vld [vmem:[%s1600_s16 + $0xf0] sm:$0xf0] }
  0x2f   : > { %v1217_v8 = vor.u32 %v1298_v5, %v1216_v3  ;;  %v1093_v9 = vor.u32 %v1264_v6, %v1090_v7  ;;  %v1296_v10 = vld [vmem:[%s1600_s16 + $0x1e4] sm:$0xf]  ;;  %v1218_v11 = vld [vmem:[%s1600_s16 + $0x1f0] sm:$0xf0]  ;;  %v1072_v12 = vld [vmem:[%s1600_s16 + $0xc0] sm:$0xf] }
  0x30   : > { %702 = vmatpush.bf16.msra.mxu0 %v1089_v4  ;;  %v1221_v13 = vor.u32 %v1296_v10, %v1218_v11  ;;  %v1262_v14 = vld [vmem:[%s1600_s16 + $0xcc] sm:$0xf0]  ;;  %v1200_v15 = vld [vmem:[%s1600_s16 + $0x1c0] sm:$0xf]  ;;  %v1260_v19 = vld [vmem:[%s1600_s16 + $0xc4] sm:$0xf] }
  0x31   : > { %v1294_v16 = vld [vmem:[%s1600_s16 + $0x1cc] sm:$0xf0]  ;;  %715 = vmatpush.bf16.msra.mxu1 %v1217_v8  ;;  %728 = vmatpush.bf16.msra.mxu2 %v1093_v9  ;;  %v1073_v17 = vor.u32 %v1262_v14, %v1072_v12  ;;  %v1074_v20 = vld [vmem:[%s1600_s16 + $0xd0] sm:$0xf0]  ;;  %v1292_v21 = vld [vmem:[%s1600_s16 + $0x1c4] sm:$0xf] }
  0x32   : > { %v1201_v18 = vor.u32 %v1294_v16, %v1200_v15  ;;  %741 = vmatpush.bf16.msra.mxu3 %v1221_v13  ;;  %v1077_v22 = vor.u32 %v1260_v19, %v1074_v20  ;;  %v1202_v23 = vld [vmem:[%s1600_s16 + $0x1d0] sm:$0xf0]  ;;  %v1056_v24 = vld [vmem:[%s1600_s16 + $0xa0] sm:$0xf]  ;;  %v1258_v25 = vld [vmem:[%s1600_s16 + $0xac] sm:$0xf0] }
  0x33   : > { %v1205_v26 = vor.u32 %v1292_v21, %v1202_v23  ;;  %v1184_v27 = vld [vmem:[%s1600_s16 + $0x1a0] sm:$0xf]  ;;  %v1290_v28 = vld [vmem:[%s1600_s16 + $0x1ac] sm:$0xf0]  ;;  %v1256_v29 = vld [vmem:[%s1600_s16 + $0xa4] sm:$0xf]  ;;  %v1057_v30 = vor.u32 %v1258_v25, %v1056_v24 }
  0x34   : > { %703 = vmatpush.bf16.msra.mxu0 %v1073_v17  ;;  %v1058_v31 = vld [vmem:[%s1600_s16 + $0xb0] sm:$0xf0]  ;;  %v1288_v32 = vld [vmem:[%s1600_s16 + $0x1a4] sm:$0xf]  ;;  %v1185_v34 = vor.u32 %v1290_v28, %v1184_v27  ;;  %v1040_v36 = vld [vmem:[%s1600_s16 + $0x80] sm:$0xf] }
  0x35   : > { %v1186_v33 = vld [vmem:[%s1600_s16 + $0x1b0] sm:$0xf0]  ;;  %716 = vmatpush.bf16.msra.mxu1 %v1201_v18  ;;  %729 = vmatpush.bf16.msra.mxu2 %v1077_v22  ;;  %v1061_v35 = vor.u32 %v1256_v29, %v1058_v31  ;;  %v1254_v37 = vld [vmem:[%s1600_s16 + $0x8c] sm:$0xf0]  ;;  %v1168_v38 = vld [vmem:[%s1600_s16 + $0x180] sm:$0xf] }
  0x36   : > { %742 = vmatpush.bf16.msra.mxu3 %v1205_v26  ;;  %v1189_v39 = vor.u32 %v1288_v32, %v1186_v33  ;;  %v1286_v40 = vld [vmem:[%s1600_s16 + $0x18c] sm:$0xf0]  ;;  %v1252_v41 = vld [vmem:[%s1600_s16 + $0x84] sm:$0xf]  ;;  %v1042_v42 = vld [vmem:[%s1600_s16 + $0x90] sm:$0xf0]  ;;  %v1041_v45 = vor.u32 %v1254_v37, %v1040_v36 }
  0x37   : > { %v1284_v43 = vld [vmem:[%s1600_s16 + $0x184] sm:$0xf]  ;;  %v1170_v44 = vld [vmem:[%s1600_s16 + $0x190] sm:$0xf0]  ;;  %v1169_v46 = vor.u32 %v1286_v40, %v1168_v38  ;;  %v1045_v47 = vor.u32 %v1252_v41, %v1042_v42  ;;  %v1024_v48 = vld [vmem:[%s1600_s16 + $0x60] sm:$0xf] }
  0x38   : > { %704 = vmatpush.bf16.msra.mxu0 %v1057_v30  ;;  %v1250_v49 = vld [vmem:[%s1600_s16 + $0x6c] sm:$0xf0]  ;;  %v1152_v50 = vld [vmem:[%s1600_s16 + $0x160] sm:$0xf]  ;;  %v1173_v51 = vor.u32 %v1284_v43, %v1170_v44  ;;  %v1248_v53 = vld [vmem:[%s1600_s16 + $0x64] sm:$0xf] }
  0x39   : > { %717 = vmatpush.bf16.msra.mxu1 %v1185_v34  ;;  %730 = vmatpush.bf16.msra.mxu2 %v1061_v35  ;;  %v1282_v52 = vld [vmem:[%s1600_s16 + $0x16c] sm:$0xf0]  ;;  %v1026_v54 = vld [vmem:[%s1600_s16 + $0x70] sm:$0xf0]  ;;  %v1280_v55 = vld [vmem:[%s1600_s16 + $0x164] sm:$0xf]  ;;  %v1025_v57 = vor.u32 %v1250_v49, %v1024_v48 }
  0x3a   : > { %743 = vmatpush.bf16.msra.mxu3 %v1189_v39  ;;  %v1154_v56 = vld [vmem:[%s1600_s16 + $0x170] sm:$0xf0]  ;;  %v1153_v58 = vor.u32 %v1282_v52, %v1152_v50  ;;  %v1029_v59 = vor.u32 %v1248_v53, %v1026_v54  ;;  %v1008_v60 = vld [vmem:[%s1600_s16 + $0x40] sm:$0xf]  ;;  %v1246_v61 = vld [vmem:[%s1600_s16 + $0x4c] sm:$0xf0] }
  0x3b   : > { %v1136_v62 = vld [vmem:[%s1600_s16 + $0x140] sm:$0xf]  ;;  %v1157_v63 = vor.u32 %v1280_v55, %v1154_v56  ;;  %v1278_v0 = vld [vmem:[%s1600_s16 + $0x14c] sm:$0xf0]  ;;  %v1244_v1 = vld [vmem:[%s1600_s16 + $0x44] sm:$0xf]  ;;  %v1009_v5 = vor.u32 %v1246_v61, %v1008_v60 }
  0x3c   : > { %705 = vmatpush.bf16.msra.mxu0 %v1041_v45  ;;  %v1010_v2 = vld [vmem:[%s1600_s16 + $0x50] sm:$0xf0]  ;;  %v1276_v3 = vld [vmem:[%s1600_s16 + $0x144] sm:$0xf]  ;;  %v1137_v6 = vor.u32 %v1278_v0, %v1136_v62  ;;  %v992_v8 = vld [vmem:[%s1600_s16 + $0x20] sm:$0xf] }
  0x3d   : > { %718 = vmatpush.bf16.msra.mxu1 %v1169_v46  ;;  %731 = vmatpush.bf16.msra.mxu2 %v1045_v47  ;;  %v1138_v4 = vld [vmem:[%s1600_s16 + $0x150] sm:$0xf0]  ;;  %v1013_v7 = vor.u32 %v1244_v1, %v1010_v2  ;;  %v1242_v9 = vld [vmem:[%s1600_s16 + $0x2c] sm:$0xf0]  ;;  %v1120_v10 = vld [vmem:[%s1600_s16 + $0x120] sm:$0xf] }
  0x3e   : > { %744 = vmatpush.bf16.msra.mxu3 %v1173_v51  ;;  %v1141_v11 = vor.u32 %v1276_v3, %v1138_v4  ;;  %v1274_v12 = vld [vmem:[%s1600_s16 + $0x12c] sm:$0xf0]  ;;  %v1240_v13 = vld [vmem:[%s1600_s16 + $0x24] sm:$0xf]  ;;  %v994_v14 = vld [vmem:[%s1600_s16 + $0x30] sm:$0xf0]  ;;  %v993_v18 = vor.u32 %v1242_v9, %v992_v8 }
  0x3f   : > { %v1272_v15 = vld [vmem:[%s1600_s16 + $0x124] sm:$0xf]  ;;  %v1122_v16 = vld [vmem:[%s1600_s16 + $0x130] sm:$0xf0]  ;;  %v976_v17 = vld [vmem:[%s1600_s16] sm:$0xf]  ;;  %v1121_v22 = vor.u32 %v1274_v12, %v1120_v10  ;;  %v997_v23 = vor.u32 %v1240_v13, %v994_v14 }
  0x40   : > { %706 = vmatpush.bf16.msra.mxu0 %v1025_v57  ;;  %v1238_v19 = vld [vmem:[%s1600_s16 + $0xc] sm:$0xf0]  ;;  %v1104_v20 = vld [vmem:[%s1600_s16 + $0x100] sm:$0xf]  ;;  %v1236_v24 = vld [vmem:[%s1600_s16 + $0x4] sm:$0xf]  ;;  %v1125_v27 = vor.u32 %v1272_v15, %v1122_v16 }
  0x41   : > { %719 = vmatpush.bf16.msra.mxu1 %v1153_v58  ;;  %732 = vmatpush.bf16.msra.mxu2 %v1029_v59  ;;  %v1270_v21 = vld [vmem:[%s1600_s16 + $0x10c] sm:$0xf0]  ;;  %v978_v25 = vld [vmem:[%s1600_s16 + $0x10] sm:$0xf0]  ;;  %v1268_v26 = vld [vmem:[%s1600_s16 + $0x104] sm:$0xf]  ;;  %v977_v34 = vor.u32 %v1238_v19, %v976_v17 }
  0x42   : > { %745 = vmatpush.bf16.msra.mxu3 %v1157_v63  ;;  %v1106_v28 = vld [vmem:[%s1600_s16 + $0x110] sm:$0xf0]  ;;  %v1096_v29 = vld [vmem:[%s1600_s16 + $0xe8] sm:$0xf]  ;;  %v1267_v30 = vld [vmem:[%s1600_s16 + $0xf4] sm:$0xf0]  ;;  %v1105_v37 = vor.u32 %v1270_v21, %v1104_v20  ;;  %v981_v38 = vor.u32 %v1236_v24, %v978_v25 }
  0x43   : > { %v1224_v31 = vld [vmem:[%s1600_s16 + $0x1e8] sm:$0xf]  ;;  %v1299_v32 = vld [vmem:[%s1600_s16 + $0x1f4] sm:$0xf0]  ;;  %v311_v33 = vld [vmem:[%s1594_s13] sm:$0x3]  ;;  %v1109_v41 = vor.u32 %v1268_v26, %v1106_v28  ;;  %v1097_v42 = vor.u32 %v1267_v30, %v1096_v29 }
  0x44   : > { %707 = vmatpush.bf16.msra.mxu0 %v1009_v5  ;;  %v1265_v35 = vld [vmem:[%s1600_s16 + $0xec] sm:$0xf]  ;;  %v1098_v36 = vld [vmem:[%s1600_s16 + $0xf8] sm:$0xf0]  ;;  %377 = vst [vmem:[#allocation1] ss:$9 sm:$0xff] %v311_v33  ;;  %v1225_v43 = vor.u32 %v1299_v32, %v1224_v31 }
  0x45   : > { %720 = vmatpush.bf16.msra.mxu1 %v1137_v6  ;;  %733 = vmatpush.bf16.msra.mxu2 %v1013_v7  ;;  %v1297_v39 = vld [vmem:[%s1600_s16 + $0x1ec] sm:$0xf]  ;;  %v1226_v40 = vld [vmem:[%s1600_s16 + $0x1f8] sm:$0xf0]  ;;  %v1101_v44 = vor.u32 %v1265_v35, %v1098_v36  ;;  %v1080_v45 = vld [vmem:[%s1600_s16 + $0xc8] sm:$0xf] }
  0x46   : > { %746 = vmatpush.bf16.msra.mxu3 %v1141_v11  ;;  %v1263_v46 = vld [vmem:[%s1600_s16 + $0xd4] sm:$0xf0]  ;;  %v1208_v47 = vld [vmem:[%s1600_s16 + $0x1c8] sm:$0xf]  ;;  %v1229_v48 = vor.u32 %v1297_v39, %v1226_v40  ;;  %v1261_v50 = vld [vmem:[%s1600_s16 + $0xcc] sm:$0xf] }
  0x47   : > { %v1295_v49 = vld [vmem:[%s1600_s16 + $0x1d4] sm:$0xf0]  ;;  %v1082_v51 = vld [vmem:[%s1600_s16 + $0xd8] sm:$0xf0]  ;;  %v1293_v52 = vld [vmem:[%s1600_s16 + $0x1cc] sm:$0xf]  ;;  %v1081_v54 = vor.u32 %v1263_v46, %v1080_v45 }
  0x48   : > { %708 = vmatpush.bf16.msra.mxu0 %v993_v18  ;;  %v1210_v53 = vld [vmem:[%s1600_s16 + $0x1d8] sm:$0xf0]  ;;  %v1064_v55 = vld [vmem:[%s1600_s16 + $0xa8] sm:$0xf]  ;;  %v1259_v56 = vld [vmem:[%s1600_s16 + $0xb4] sm:$0xf0]  ;;  %v1209_v57 = vor.u32 %v1295_v49, %v1208_v47  ;;  %v1085_v58 = vor.u32 %v1261_v50, %v1082_v51 }
  0x49   : > { %721 = vmatpush.bf16.msra.mxu1 %v1121_v22  ;;  %734 = vmatpush.bf16.msra.mxu2 %v997_v23  ;;  %v1192_v61 = vld [vmem:[%s1600_s16 + $0x1a8] sm:$0xf]  ;;  %v1213_v62 = vor.u32 %v1293_v52, %v1210_v53  ;;  %v1291_v63 = vld [vmem:[%s1600_s16 + $0x1b4] sm:$0xf0]  ;;  %v1257_v0 = vld [vmem:[%s1600_s16 + $0xac] sm:$0xf]  ;;  %v1065_v4 = vor.u32 %v1259_v56, %v1064_v55 }
  0x4a   : > { %747 = vmatpush.bf16.msra.mxu3 %v1125_v27  ;;  %v1066_v1 = vld [vmem:[%s1600_s16 + $0xb8] sm:$0xf0]  ;;  %v1289_v2 = vld [vmem:[%s1600_s16 + $0x1ac] sm:$0xf]  ;;  %v1193_v5 = vor.u32 %v1291_v63, %v1192_v61  ;;  %v1048_v7 = vld [vmem:[%s1600_s16 + $0x88] sm:$0xf] }
  0x4b   : > { %v1690_v59 = vld [vmem:[#allocation1] sm:$0xff]  ;;  %v1692_v60 = vld [vmem:[#allocation1 + $0x9] sm:$0xff]  ;;  %v1069_v6 = vor.u32 %v1257_v0, %v1066_v1  ;;  %v1176_v9 = vld [vmem:[%s1600_s16 + $0x188] sm:$0xf]  ;;  %vm813_vm0 = vcmask 1041408   ;;  %vm815_vm1 = vcmask 1045508  }
  0x4c   : > { %709 = vmatpush.bf16.msra.mxu0 %v977_v34  ;;  %v1194_v3 = vld [vmem:[%s1600_s16 + $0x1b8] sm:$0xf0]  ;;  %v1255_v8 = vld [vmem:[%s1600_s16 + $0x94] sm:$0xf0]  ;;  %v1253_v12 = vld [vmem:[%s1600_s16 + $0x8c] sm:$0xf] }
  0x4d   : > { %722 = vmatpush.bf16.msra.mxu1 %v1105_v37  ;;  %735 = vmatpush.bf16.msra.mxu2 %v981_v38  ;;  %v1197_v10 = vor.u32 %v1289_v2, %v1194_v3  ;;  %v1287_v11 = vld [vmem:[%s1600_s16 + $0x194] sm:$0xf0]  ;;  %v1050_v13 = vld [vmem:[%s1600_s16 + $0x98] sm:$0xf0]  ;;  %v1285_v14 = vld [vmem:[%s1600_s16 + $0x18c] sm:$0xf]  ;;  %v1049_v16 = vor.u32 %v1255_v8, %v1048_v7 }
  0x4e   : > { %748 = vmatpush.bf16.msra.mxu3 %v1109_v41  ;;  %v1178_v15 = vld [vmem:[%s1600_s16 + $0x198] sm:$0xf0]  ;;  %v1177_v17 = vor.u32 %v1287_v11, %v1176_v9  ;;  %v1053_v18 = vor.u32 %v1253_v12, %v1050_v13  ;;  %v1032_v19 = vld [vmem:[%s1600_s16 + $0x68] sm:$0xf]  ;;  %v1251_v20 = vld [vmem:[%s1600_s16 + $0x74] sm:$0xf0] }
  0x4f   : > { %710 = vmatmul.bf16.vlgmr.msra.gmra.mxu0 %v1690_v59  ;;  %v1160_v21 = vld [vmem:[%s1600_s16 + $0x168] sm:$0xf]  ;;  %v1181_v22 = vor.u32 %v1285_v14, %v1178_v15  ;;  %v1283_v23 = vld [vmem:[%s1600_s16 + $0x174] sm:$0xf0]  ;;  %v1249_v24 = vld [vmem:[%s1600_s16 + $0x6c] sm:$0xf]  ;;  %v1033_v28 = vor.u32 %v1251_v20, %v1032_v19 }
  0x50   : > { %754 = vmatpush.bf16.msrb.mxu0 %v1097_v42  ;;  %736 = vmatmul.bf16.vlgmr.msra.gmra.mxu2 %v1690_v59  ;;  %v1034_v25 = vld [vmem:[%s1600_s16 + $0x78] sm:$0xf0]  ;;  %v1281_v26 = vld [vmem:[%s1600_s16 + $0x16c] sm:$0xf]  ;;  %v1161_v29 = vor.u32 %v1283_v23, %v1160_v21  ;;  %v1016_v31 = vld [vmem:[%s1600_s16 + $0x48] sm:$0xf] }
  0x51   : > { %767 = vmatpush.bf16.msrb.mxu1 %v1225_v43  ;;  %780 = vmatpush.bf16.msrb.mxu2 %v1101_v44  ;;  %v1162_v27 = vld [vmem:[%s1600_s16 + $0x178] sm:$0xf0]  ;;  %v1037_v30 = vor.u32 %v1249_v24, %v1034_v25  ;;  %v1247_v32 = vld [vmem:[%s1600_s16 + $0x54] sm:$0xf0]  ;;  %v1144_v33 = vld [vmem:[%s1600_s16 + $0x148] sm:$0xf] }
  0x52   : > { %793 = vmatpush.bf16.msrb.mxu3 %v1229_v48  ;;  %723 = vmatmul.bf16.vlgmr.msra.gmra.mxu1 %v1692_v60  ;;  %v1165_v34 = vor.u32 %v1281_v26, %v1162_v27  ;;  %v1279_v35 = vld [vmem:[%s1600_s16 + $0x154] sm:$0xf0]  ;;  %v1245_v36 = vld [vmem:[%s1600_s16 + $0x4c] sm:$0xf]  ;;  %v1018_v37 = vld [vmem:[%s1600_s16 + $0x58] sm:$0xf0]  ;;  %v1017_v40 = vor.u32 %v1247_v32, %v1016_v31 }
  0x53   : > { %749 = vmatmul.bf16.vlgmr.msra.gmra.mxu3 %v1692_v60  ;;  %v1277_v38 = vld [vmem:[%s1600_s16 + $0x14c] sm:$0xf]  ;;  %v1146_v39 = vld [vmem:[%s1600_s16 + $0x158] sm:$0xf0]  ;;  %v1145_v41 = vor.u32 %v1279_v35, %v1144_v33  ;;  %v1021_v42 = vor.u32 %v1245_v36, %v1018_v37  ;;  %v1000_v43 = vld [vmem:[%s1600_s16 + $0x28] sm:$0xf] }
  0x54   : > { %755 = vmatpush.bf16.msrb.mxu0 %v1081_v54  ;;  %v1243_v44 = vld [vmem:[%s1600_s16 + $0x34] sm:$0xf0]  ;;  %v1128_v45 = vld [vmem:[%s1600_s16 + $0x128] sm:$0xf]  ;;  %v1149_v46 = vor.u32 %v1277_v38, %v1146_v39  ;;  %v1241_v48 = vld [vmem:[%s1600_s16 + $0x2c] sm:$0xf] }
  0x55   : > { %768 = vmatpush.bf16.msrb.mxu1 %v1209_v57  ;;  %781 = vmatpush.bf16.msrb.mxu2 %v1085_v58  ;;  %v1275_v47 = vld [vmem:[%s1600_s16 + $0x134] sm:$0xf0]  ;;  %v1002_v49 = vld [vmem:[%s1600_s16 + $0x38] sm:$0xf0]  ;;  %v1273_v50 = vld [vmem:[%s1600_s16 + $0x12c] sm:$0xf]  ;;  %v1001_v52 = vor.u32 %v1243_v44, %v1000_v43 }
  0x56   : > { %794 = vmatpush.bf16.msrb.mxu3 %v1213_v62  ;;  %v1130_v51 = vld [vmem:[%s1600_s16 + $0x138] sm:$0xf0]  ;;  %v1129_v53 = vor.u32 %v1275_v47, %v1128_v45  ;;  %v1005_v54 = vor.u32 %v1241_v48, %v1002_v49  ;;  %v984_v55 = vld [vmem:[%s1600_s16 + $0x8] sm:$0xf]  ;;  %v1239_v56 = vld [vmem:[%s1600_s16 + $0x14] sm:$0xf0] }
  0x57   : > { %v1112_v57 = vld [vmem:[%s1600_s16 + $0x108] sm:$0xf]  ;;  %v1133_v58 = vor.u32 %v1273_v50, %v1130_v51  ;;  %v1271_v61 = vld [vmem:[%s1600_s16 + $0x114] sm:$0xf0]  ;;  %v1237_v62 = vld [vmem:[%s1600_s16 + $0xc] sm:$0xf]  ;;  %v985_v2 = vor.u32 %v1239_v56, %v984_v55 }
  0x58   : > { %756 = vmatpush.bf16.msrb.mxu0 %v1065_v4  ;;  %v986_v63 = vld [vmem:[%s1600_s16 + $0x18] sm:$0xf0]  ;;  %v1269_v0 = vld [vmem:[%s1600_s16 + $0x10c] sm:$0xf]  ;;  %v1113_v3 = vor.u32 %v1271_v61, %v1112_v57  ;;  %vm817_vm2 = vcmask 1043456   ;;  %v310_v25 = vld [vmem:[#allocation2] sm:$0xff] }
  0x59   : > { %769 = vmatpush.bf16.msrb.mxu1 %v1193_v5  ;;  %782 = vmatpush.bf16.msrb.mxu2 %v1069_v6  ;;  %v1114_v1 = vld [vmem:[%s1600_s16 + $0x118] sm:$0xf0]  ;;  %v989_v4 = vor.u32 %v1237_v62, %v986_v63  ;;  %p1230_p0 = scmp.ne.s32.totalorder %s1469_s22, 2 }
  0x5a   : > { %795 = vmatpush.bf16.msrb.mxu3 %v1197_v10  ;;  %v1117_v5 = vor.u32 %v1269_v0, %v1114_v1  ;;  %s861_s22 = sld [smem:[#allocation4]] (!%p1230_p0) }
  0x5c   : > { %757 = vmatpush.bf16.msrb.mxu0 %v1049_v16 }
  0x5d   : > { %770 = vmatpush.bf16.msrb.mxu1 %v1177_v17  ;;  %783 = vmatpush.bf16.msrb.mxu2 %v1053_v18 }
  0x5e   : > { %796 = vmatpush.bf16.msrb.mxu3 %v1181_v22 }
  0x60   : > { %758 = vmatpush.bf16.msrb.mxu0 %v1033_v28 }
  0x61   : > { %771 = vmatpush.bf16.msrb.mxu1 %v1161_v29  ;;  %784 = vmatpush.bf16.msrb.mxu2 %v1037_v30 }
  0x62   : > { %797 = vmatpush.bf16.msrb.mxu3 %v1165_v34 }
  0x64   : > { %759 = vmatpush.bf16.msrb.mxu0 %v1017_v40 }
  0x65   : > { %772 = vmatpush.bf16.msrb.mxu1 %v1145_v41  ;;  %785 = vmatpush.bf16.msrb.mxu2 %v1021_v42 }
  0x66   : > { %798 = vmatpush.bf16.msrb.mxu3 %v1149_v46 }
  0x68   : > { %760 = vmatpush.bf16.msrb.mxu0 %v1001_v52 }
  0x69   : > { %773 = vmatpush.bf16.msrb.mxu1 %v1129_v53  ;;  %786 = vmatpush.bf16.msrb.mxu2 %v1005_v54 }
  0x6a   : > { %799 = vmatpush.bf16.msrb.mxu3 %v1133_v58 }
  0x6c   : > { %761 = vmatpush.bf16.msrb.mxu0 %v985_v2 }
  0x6d   : > { %774 = vmatpush.bf16.msrb.mxu1 %v1113_v3  ;;  %787 = vmatpush.bf16.msrb.mxu2 %v989_v4 }
  0x6e   : > { %800 = vmatpush.bf16.msrb.mxu3 %v1117_v5 }
  0x6f   : > { %762 = vmatmul.bf16.vlgmr.msrb.gmra.mxu0 %v1690_v59 }
  0x70   : > { %775 = vmatmul.bf16.vlgmr.msrb.gmra.mxu1 %v1692_v60  ;;  %788 = vmatmul.bf16.vlgmr.msrb.gmra.mxu2 %v1690_v59 }
  0x71   : > { %801 = vmatmul.bf16.vlgmr.msrb.gmra.mxu3 %v1692_v60 }
  0xcc   : > { %v711_v6 = vpop.f32.mrf.mxu0 }
  0xcf   : > { %v724_v7 = vpop.f32.mrf.mxu1 }
  0xd0   : > { %v725_v21 = vadd.f32 %v724_v7, %v711_v6 }
  0xd3   : > { %v737_v8 = vpop.f32.mrf.mxu2 }
  0xd4   : > { %v713_v10 = vpop.f32.mrf.mxu0 }
  0xd6   : > { %v750_v9 = vpop.f32.mrf.mxu3 }
  0xd7   : > { %v726_v11 = vpop.f32.mrf.mxu1  ;;  %v751_v16 = vadd.f32 %v750_v9, %v737_v8 }
  0xd9   : > { %v810_v22 = vrot.slane %v751_v16, 6 }
  0xdb   : > { %v739_v12 = vpop.f32.mrf.mxu2  ;;  %v814_v26 = vsel %vm813_vm0, %v725_v21, %v810_v22 }
  0xde   : > { %v752_v13 = vpop.f32.mrf.mxu3 }
  0xec   : > { %v763_v14 = vpop.f32.mrf.mxu0 }
  0xed   : > { %v776_v15 = vpop.f32.mrf.mxu1 }
  0xee   : > { %v777_v17 = vadd.f32 %v776_v15, %v763_v14 }
  0xf0   : > { %v811_v59 = vrot.slane %v777_v17, 4 }
  0xf3   : > { %v789_v18 = vpop.f32.mrf.mxu2 }
  0xf4   : > { %v802_v19 = vpop.f32.mrf.mxu3  ;;  %v765_v20 = vpop.f32.mrf.mxu0 }
  0xf5   : > { %v803_v23 = vadd.f32 %v802_v19, %v789_v18  ;;  %v778_v60 = vpop.f32.mrf.mxu1 }
  0xf7   : > { %v812_v24 = vrot.slane %v803_v23, 2 }
  0xf9   : > { %v816_v27 = vsel %vm815_vm1, %v811_v59, %v812_v24  ;;  %825 = sbr.rel (%p1230_p0) target bundleno = 400 (0x190), region = 56 }
  0xfa   : > { %v818_v28 = vsel %vm817_vm2, %v814_v26, %v816_v27 }
  0xfb   : > { %v820_v29 = vadd.f32 %v818_v28, %v310_v25  ;;  %v791_v30 = vpop.f32.mrf.mxu2 }
  0xfc   : > { %v804_v31 = vpop.f32.mrf.mxu3 }
  0xfd   : > { %821 = vst [vmem:[#allocation2] sm:$0xff] %v820_v29 }
  0xfe   : > { %v828_v32 = vld [vmem:[%s1786_s3] sm:$0xf]  ;;  %v862_v57 = vstv %s861_s22  ;;  %vm864_vm3 = vcmask 1024  }
  0xff   : > { %v830_v34 = vperm.slane %v828_v32, 0  ;;  %v831_v35 = vperm.slane %v828_v32, 1  ;;  %v832_v36 = vperm.slane %v828_v32, 2  ;;  %v833_v37 = vperm.slane %v828_v32, 3 }
 0x101   : > { %v834_v38 = vrot.slane %v831_v35, 6  ;;  %v835_v39 = vrot.slane %v832_v36, 4  ;;  %v836_v41 = vrot.slane %v833_v37, 2 }
 0x103   : > { %v837_v42 = vsel %vm813_vm0, %v830_v34, %v834_v38  ;;  %v838_v43 = vsel %vm815_vm1, %v835_v39, %v836_v41 }
 0x104   : > { %v826_v33 = vld [vmem:[#allocation2] sm:$0xff]  ;;  %v839_v44 = vsel %vm817_vm2, %v837_v42, %v838_v43 }
 0x105   : > { %v827_v40 = vand.u32 2147483647, %v826_v33 }
 0x107   : > { %v841_v45 = vmul.f32 %v839_v44, %v827_v40 }
 0x109   : > { %843 = vst [vmem:[#allocation1] ss:$4 sm:$0xff] %v841_v45 }
 0x110   : > { %v844_v46 = vld.sshfl [vmem:[#allocation1] sm:$0xff pattern:$0x73625140]  ;;  %v845_v47 = vld.sshfl [vmem:[#allocation1 + $0x8] sm:$0xff pattern:$0x73625140] }
 0x111   : > { %v846_v48 = vld.sshfl [vmem:[#allocation1 + $0x10] sm:$0xff pattern:$0x73625140]  ;;  %v847_v49 = vld.sshfl [vmem:[#allocation1 + $0x18] sm:$0xff pattern:$0x73625140] }
 0x112   : > { %v852_v50 = vsel %vm813_vm0, %v844_v46, 0.0  ;;  %v853_v51 = vsel %vm813_vm0, %v845_v47, 0.0  ;;  %v855_v52 = vsel %vm813_vm0, %v846_v48, 0.0  ;;  %v857_v54 = vsel %vm813_vm0, %v847_v49, 0.0 }
 0x113   : > { %v854_v53 = vadd.f32 %v853_v51, %v852_v50 }
 0x115   : > { %v856_v55 = vadd.f32 %v855_v52, %v854_v53 }
 0x117   : > { %v858_v56 = vadd.f32 %v857_v54, %v856_v55 }
 0x119   : > { %859 = vadd.xlane.f32.xlu0 %v858_v56 }
 0x18c   : > { %v860_v58 = vpop.xlane.xlu0 %859 }
 0x18d   : > { %v863_v61 = vadd.f32 %v862_v57, %v860_v58 }
 0x18f   : > { %865 = vst.msk [vmem:[%s1788_s5] sm:$0x3] %vm864_vm3, %v863_v61 }
 0x190 PF: > { %s23_s24 = sadd.s32 1, %s1477_s24   ;;  %s1792_s0 = smov %s1461_s20 }
 0x191   : > { %p20_p1 = scmp.ge.s32.totalorder %s23_s24, 5   ;;  %s1793_s20 = smov %s1465_s21 }
 0x192   : > { %s1794_s21 = smov %s1564_s30  ;;  %s1795_s22 = smov %s1473_s23 }
 0x193   : > { %s1796_s23 = smov %s1798_s25  ;;  %22 = sbr.rel (!%p20_p1) target bundleno = 8 (0x8), region = 101 }
 0x198   :  { %885 = vsyncpa [#allocation6], 1 }
 0x199   :  { %887 = vsyncpa [#allocation6 + $0x1], 1 }
 0x19a   :  { %888 = vsyncpa [#allocation8], 1 }
 0x19b   :  { %890 = vsyncpa [#allocation8 + $0x1], 1 }

</bundles_post_ra>
